<compile_context>
chip_gen: v6e
topology: v6e:2x2x1
jax: 0.10.0
libtpu: 0.0.40
codegen_flags: <defaults>
</compile_context>

<pallas_src>
import jax
import jax.numpy as jnp
from jax import lax
from jax.experimental import pallas as pl
from jax.experimental.pallas import tpu as pltpu


def _round_up(x, m):
    return (x + m - 1) // m * m


def _luong_general_kernel(hidden_ref, enc_ref, wa_ref, b_ref, attn_ref, ctx_ref):
    """One batch tile: hidden (TB,H), enc (TB,S,H) -> attn (TB,S), ctx (TB,H)."""
    enc = enc_ref[...]                                           # (TB, S, H), native dtype

    # Wa(hidden) == hidden @ Wa^T + b. Contract the last dim of BOTH operands so the MXU
    # consumes the (out, in)-layout weight directly (no in-kernel transpose / relayout).
    wh = lax.dot_general(hidden_ref[...], wa_ref[...],
                         dimension_numbers=(((1,), (1,)), ((), ())),
                         preferred_element_type=jnp.float32)     # (TB, H) f32
    wh = wh + b_ref[...].astype(jnp.float32)

    # scores[b, s] = <enc[b, s, :], Wa(hidden)[b, :]>  -- batched MXU contraction (q = 1).
    wh3 = wh.astype(enc.dtype)[:, None, :]                       # (TB, 1, H)
    scores = jnp.einsum('bqh,bsh->bqs', wh3, enc,
                        preferred_element_type=jnp.float32)      # (TB, 1, S) f32

    # softmax over the seq axis (PyTorch F.softmax(..., dim=1)), f32 math.
    m = jnp.max(scores, axis=-1, keepdims=True)
    e = jnp.exp(scores - m)
    attn = e / jnp.sum(e, axis=-1, keepdims=True)                # (TB, 1, S) f32

    # context[b, :] = sum_s attn[b, s] * enc[b, s, :]  -- batched MXU contraction.
    ctx = jnp.einsum('bqs,bsh->bqh', attn.astype(enc.dtype), enc,
                     preferred_element_type=jnp.float32)         # (TB, 1, H) f32

    # Lane-dense 2-D stores; the singleton q axis is squeezed here (tiny relayout).
    attn_ref[...] = attn[:, 0, :].astype(attn_ref.dtype)         # (TB, S)
    ctx_ref[...] = ctx[:, 0, :].astype(ctx_ref.dtype)            # (TB, H)


def _choose_batch_tile(B, S, H, itemsize, target_block_bytes=2 << 20):
    """Multiple-of-8 batch tile targeting ~2 MiB encoder blocks; keep >=2 grid steps if possible."""
    row_bytes = max(1, S * H * itemsize)
    tb = max(8, min(512, (target_block_bytes // row_bytes) // 8 * 8))
    tb = min(tb, _round_up(B, 8))                       # never bigger than the (8-padded) batch
    if B > 8 and pl.cdiv(B, tb) < 2:                    # keep >=2 steps so megacore can split batch
        tb = max(8, _round_up(pl.cdiv(B, 2), 8))
    return int(tb)


def luong_attention(hidden, encoder_outputs, wa, b, *, method="general", batch_tile=None):
    """hidden (B,H), encoder_outputs (B,S,H), wa (H,H) in PyTorch (out,in) layout, b (H,).

    Returns (attention_weights (B,S,1), context_vector (B,H)) matching the PyTorch module.
    """
    if method != "general":
        # TODO(synk): 'dot' and 'concat' scoring methods are not implemented; module default is 'general'.
        raise NotImplementedError("only method='general' is implemented")

    B, S, H = encoder_outputs.shape
    assert hidden.shape == (B, H) and wa.shape == (H, H) and b.shape == (H,)
    out_dtype = encoder_outputs.dtype
    itemsize = jnp.dtype(out_dtype).itemsize

    TB = int(batch_tile) if batch_tile is not None else _choose_batch_tile(B, S, H, itemsize)
    grid = (pl.cdiv(B, TB),)

    # VMEM budget: double-buffered streamed blocks + resident weights + margin (v7x has 64 MiB).
    enc_blk = TB * S * H * itemsize
    io_blk = TB * H * itemsize + TB * S * itemsize + TB * H * itemsize
    w_blk = H * H * jnp.dtype(wa.dtype).itemsize + H * jnp.dtype(b.dtype).itemsize
    est = 2 * (enc_blk + io_blk + w_blk) + (1 << 20)
    vmem_limit = int(min(56 << 20, max(24 << 20, 2 * est)))

    attn2d, ctx = pl.pallas_call(
        _luong_general_kernel,
        out_shape=(jax.ShapeDtypeStruct((B, S), out_dtype),
                   jax.ShapeDtypeStruct((B, H), out_dtype)),
        grid_spec=pltpu.PrefetchScalarGridSpec(
            num_scalar_prefetch=0,
            grid=grid,
            in_specs=[
                pl.BlockSpec((TB, H), lambda i: (i, 0)),         # hidden tile (native dtype)
                pl.BlockSpec((TB, S, H), lambda i: (i, 0, 0)),   # encoder tile, streamed once
                pl.BlockSpec((H, H), lambda i: (0, 0)),          # Wa: constant index -> stays resident
                pl.BlockSpec((1, H), lambda i: (0, 0)),          # bias: resident
            ],
            out_specs=(
                pl.BlockSpec((TB, S), lambda i: (i, 0)),         # lane-dense attn block
                pl.BlockSpec((TB, H), lambda i: (i, 0)),         # context block
            ),
        ),
        compiler_params=pltpu.CompilerParams(
            dimension_semantics=("parallel",),                   # megacore-shard the batch axis
            vmem_limit_bytes=vmem_limit,
        ),
    )(hidden, encoder_outputs, wa, b.reshape(1, H))

    attention_weights = attn2d.reshape(B, S, 1)                  # match PyTorch (B, S, 1) — free reshape
    return attention_weights, ctx


if __name__ == "__main__":
    B, S, H = 2, 8, 32
    key = jax.random.PRNGKey(0)
    k = jax.random.split(key, 4)
    bound = 1.0 / (H ** 0.5)

    # Deterministic synthetic parameters (PyTorch-Linear-like uniform init).
    wa = jax.random.uniform(k[0], (H, H), jnp.float32, -bound, bound)   # nn.Linear weight (out, in)
    b = jax.random.uniform(k[1], (H,), jnp.float32, -bound, bound)      # nn.Linear bias
    hidden = jax.random.normal(k[2], (B, H), jnp.float32)
    encoder_outputs = jax.random.normal(k[3], (B, S, H), jnp.float32)

    attn, ctx = luong_attention(hidden, encoder_outputs, wa, b)
    jax.block_until_ready((attn, ctx))

    # Pure-JAX reference mirroring the PyTorch forward (method='general').
    wh_ref = hidden @ wa.T + b                                           # Wa(hidden)
    scores_ref = jnp.einsum('bsh,bh->bs', encoder_outputs, wh_ref)[..., None]   # (B, S, 1)
    attn_ref = jax.nn.softmax(scores_ref, axis=1)
    ctx_ref = jnp.sum(attn_ref * encoder_outputs, axis=1)                # bmm(attn^T, enc).squeeze(1)

    assert attn.shape == (B, S, 1) and ctx.shape == (B, H)
    assert jnp.allclose(attn, attn_ref, atol=1e-5, rtol=1e-5)
    assert jnp.allclose(ctx, ctx_ref, atol=1e-5, rtol=1e-5)
    print("KERNEL_OK")
</pallas_src>

<mosaic_0001>
module attributes {stable_mosaic.version = 11 : i64} {
  func.func @_luong_general_kernel(%arg0: i32, %arg1: memref<8x32xf32, #tpu.memory_space<vmem>>, %arg2: memref<8x8x32xf32, #tpu.memory_space<vmem>>, %arg3: memref<32x32xf32, #tpu.memory_space<vmem>>, %arg4: memref<1x32xf32, #tpu.memory_space<vmem>>, %arg5: memref<8x8xf32, #tpu.memory_space<vmem>>, %arg6: memref<8x32xf32, #tpu.memory_space<vmem>>) attributes {dimension_semantics = [#tpu.dimension_semantics<parallel>], iteration_bounds = array<i64: 1>, scalar_prefetch = 0 : i64, scratch_operands = 0 : i64, tpu.core_type = #tpu.core_type<tc>, window_params = [{transform_indices = @transform_0, window_bounds = array<i64: 8, 32>}, {transform_indices = @transform_1, window_bounds = array<i64: 8, 8, 32>}, {pipeline_mode = #tpu.pipeline_mode<synchronous>, transform_indices = @transform_2, window_bounds = array<i64: 32, 32>}, {pipeline_mode = #tpu.pipeline_mode<synchronous>, transform_indices = @transform_3, window_bounds = array<i64: 1, 32>}, {transform_indices = @transform_4, window_bounds = array<i64: 8, 8>}, {transform_indices = @transform_5, window_bounds = array<i64: 8, 32>}]} {
    %c0 = arith.constant 0 : index
    %c0_0 = arith.constant 0 : index
    %c0_1 = arith.constant 0 : index
    %0 = vector.load %arg2[%c0, %c0_0, %c0_1] : memref<8x8x32xf32, #tpu.memory_space<vmem>>, vector<8x8x32xf32>
    %c0_2 = arith.constant 0 : index
    %c0_3 = arith.constant 0 : index
    %1 = vector.load %arg1[%c0_2, %c0_3] : memref<8x32xf32, #tpu.memory_space<vmem>>, vector<8x32xf32>
    %c0_4 = arith.constant 0 : index
    %c0_5 = arith.constant 0 : index
    %2 = vector.load %arg3[%c0_4, %c0_5] : memref<32x32xf32, #tpu.memory_space<vmem>>, vector<32x32xf32>
    %cst = arith.constant dense<0.000000e+00> : vector<8x32xf32>
    %3 = tpu.matmul %1, %2, %cst {dimension_numbers = #tpu.dot_dimension_numbers<[1], [1], [0], [0], [0, 0, 1, 0], [], []>} : vector<8x32xf32>, vector<32x32xf32>, vector<8x32xf32> -> vector<8x32xf32>
    %c0_6 = arith.constant 0 : index
    %c0_7 = arith.constant 0 : index
    %4 = vector.load %arg4[%c0_6, %c0_7] : memref<1x32xf32, #tpu.memory_space<vmem>>, vector<1x32xf32>
    %5 = vector.broadcast %4 : vector<1x32xf32> to vector<8x32xf32>
    %6 = arith.addf %3, %5 : vector<8x32xf32>
    %7 = vector.shape_cast %6 : vector<8x32xf32> to vector<8x1x32xf32>
    "tpu.trace_start"() <{level = 10 : i32, message = "bqh,bsh->bqs"}> : () -> ()
    %cst_8 = arith.constant dense<0.000000e+00> : vector<8x1x8xf32>
    %8 = tpu.matmul %7, %0, %cst_8 {dimension_numbers = #tpu.dot_dimension_numbers<[2], [2], [1], [1], [0, 0, 0, 1, 1, 1], [0], [0]>} : vector<8x1x32xf32>, vector<8x8x32xf32>, vector<8x1x8xf32> -> vector<8x1x8xf32>
    "tpu.trace_stop"() : () -> ()
    %cst_9 = arith.constant dense<0xFF800000> : vector<8x1xf32>
    %9 = vector.multi_reduction <maximumf>, %8, %cst_9 [2] : vector<8x1x8xf32> to vector<8x1xf32>
    %10 = vector.shape_cast %9 : vector<8x1xf32> to vector<8x1x1xf32>
    %11 = vector.broadcast %10 : vector<8x1x1xf32> to vector<8x1x8xf32>
    %12 = arith.subf %8, %11 : vector<8x1x8xf32>
    %13 = math.exp %12 : vector<8x1x8xf32>
    %cst_10 = arith.constant dense<0.000000e+00> : vector<8x1xf32>
    %14 = vector.multi_reduction <add>, %13, %cst_10 [2] : vector<8x1x8xf32> to vector<8x1xf32>
    %15 = vector.shape_cast %14 : vector<8x1xf32> to vector<8x1x1xf32>
    %16 = vector.broadcast %15 : vector<8x1x1xf32> to vector<8x1x8xf32>
    %17 = arith.divf %13, %16 : vector<8x1x8xf32>
    "tpu.trace_start"() <{level = 10 : i32, message = "bqs,bsh->bqh"}> : () -> ()
    %cst_11 = arith.constant dense<0.000000e+00> : vector<8x1x32xf32>
    %18 = tpu.matmul %17, %0, %cst_11 {dimension_numbers = #tpu.dot_dimension_numbers<[2], [1], [1], [2], [0, 0, 0, 1, 1, 2], [0], [0]>} : vector<8x1x8xf32>, vector<8x8x32xf32>, vector<8x1x32xf32> -> vector<8x1x32xf32>
    "tpu.trace_stop"() : () -> ()
    %19 = vector.shape_cast %17 : vector<8x1x8xf32> to vector<8x8xf32>
    %c0_12 = arith.constant 0 : index
    %c0_13 = arith.constant 0 : index
    %20 = vector.load %arg5[%c0_12, %c0_13] : memref<8x8xf32, #tpu.memory_space<vmem>>, vector<8x8xf32>
    tpu.vector_store %arg5[%c0_12, %c0_13], %19 {strides = array<i32>} : memref<8x8xf32, #tpu.memory_space<vmem>>, vector<8x8xf32>,
    %21 = vector.shape_cast %18 : vector<8x1x32xf32> to vector<8x32xf32>
    %c0_14 = arith.constant 0 : index
    %c0_15 = arith.constant 0 : index
    %22 = vector.load %arg6[%c0_14, %c0_15] : memref<8x32xf32, #tpu.memory_space<vmem>>, vector<8x32xf32>
    tpu.vector_store %arg6[%c0_14, %c0_15], %21 {strides = array<i32>} : memref<8x32xf32, #tpu.memory_space<vmem>>, vector<8x32xf32>,
    return
  }
  func.func @transform_0(%arg0: i32) -> (i32, i32) {
    %c0_i32 = arith.constant 0 : i32
    %c0_i32_0 = arith.constant 0 : i32
    return %arg0, %c0_i32 : i32, i32
  }
  func.func @transform_1(%arg0: i32) -> (i32, i32, i32) {
    %c0_i32 = arith.constant 0 : i32
    %c0_i32_0 = arith.constant 0 : i32
    %c0_i32_1 = arith.constant 0 : i32
    return %arg0, %c0_i32, %c0_i32_0 : i32, i32, i32
  }
  func.func @transform_2(%arg0: i32) -> (i32, i32) {
    %c0_i32 = arith.constant 0 : i32
    %c0_i32_0 = arith.constant 0 : i32
    %c0_i32_1 = arith.constant 0 : i32
    return %c0_i32, %c0_i32_0 : i32, i32
  }
  func.func @transform_3(%arg0: i32) -> (i32, i32) {
    %c0_i32 = arith.constant 0 : i32
    %c0_i32_0 = arith.constant 0 : i32
    %c0_i32_1 = arith.constant 0 : i32
    return %c0_i32, %c0_i32_0 : i32, i32
  }
  func.func @transform_4(%arg0: i32) -> (i32, i32) {
    %c0_i32 = arith.constant 0 : i32
    %c0_i32_0 = arith.constant 0 : i32
    return %arg0, %c0_i32 : i32, i32
  }
  func.func @transform_5(%arg0: i32) -> (i32, i32) {
    %c0_i32 = arith.constant 0 : i32
    %c0_i32_0 = arith.constant 0 : i32
    return %arg0, %c0_i32 : i32, i32
  }
}

</mosaic_0001>

<bundles_post_ra>
// kernel: tpu_custom_call.1
= control target key start
LH: loop header
LB: loop body
LE: loop exit
PB: predicated region body
PF: predicated region fallthrough
CT: control target
= control target key end

     0   :  { %11 = vsyncpa [#allocation3], 0  ;;  %s2103_s0 = inlined_call_operand.hbm [shape: f32[2,32], index: 0, kind: input, shape index: {}]   ;;  %s2104_s1 = inlined_call_operand.hbm [shape: f32[2,8,32], index: 1, kind: input, shape index: {}]   ;;  %s2105_s2 = inlined_call_operand.hbm [shape: f32[32,32], index: 2, kind: input, shape index: {}]   ;;  %s2106_s3 = inlined_call_operand.vmem [shape: f32[1,32], index: 3, kind: input, shape index: {}]   ;;  %s2107_s4 = inlined_call_operand.hbm [shape: f32[2,8], index: 4, kind: output, shape index: {0}]   ;;  %s2108_s5 = inlined_call_operand.hbm [shape: f32[2,32], index: 5, kind: output, shape index: {1}]  }
   0x1   :  { %12 = vsyncpa [#allocation6], 0 }
   0x2   :  { %13 = vsyncpa [#allocation4], 0 }
   0x3   :  { %14 = vsyncpa [#allocation10], 0 }
   0x4   :  { %19 = vsyncadd [#allocation3], 96  ;;  %s1883_s18 = smov [#allocation2]  }
   0x5   :  { %s20_s19 = sshll.u32 %s1883_s18, 4  ;;  %s21_s19 = int_to_ptr.vmem [resolvable:$true] %s20_s19 }
   0x6   :  { %s1783_s20 = scalar_lea.vmem %s21_s19, 32  ;;  %s1787_s21 = scalar_lea.vmem %s21_s19, 128 }
   0x7   :  { %p1784_p0 = scmp.ne.s32.totalorder %s21_s19, %s1783_s20  ;;  %p1788_p1 = scmp.lt.s32.totalorder %s21_s19, %s21_s19 }
   0x8   :  { %p1789_p2 = scmp.lt.s32.totalorder %s1787_s21, %s1783_s20 }
   0xa   :  { %p1790_p3 = por %p1789_p2, %p1788_p1 }
   0xc   :  { %p1791_p4 = pnand %p1790_p3, %p1784_p0 }
   0xe   :  { %1794 = shalt.err (!%p1791_p4)
}
   0xf   :  { %s1884_s22 = smov 32   ;;  %s1885_s23 = smov 2  }
  0x10   :  { %26 = dma.hbm_to_vmem [thread:$0]  %s2103_s0, 32, %s21_s19, [#allocation3], %s1884_s22, %s1884_s22, %s1885_s23  }
  0x11   :  { %31 = vsyncadd [#allocation6], 768  ;;  %s1886_s26 = smov [#allocation5]  }
  0x12   :  { %s32_s27 = sshll.u32 %s1886_s26, 4  ;;  %s33_s27 = int_to_ptr.vmem [resolvable:$true] %s32_s27 }
  0x13   :  { %s1803_s28 = scalar_lea.vmem %s33_s27, 256  ;;  %s1807_s29 = scalar_lea.vmem %s33_s27, 1024 }
  0x14   :  { %p1804_p5 = scmp.ne.s32.totalorder %s33_s27, %s1803_s28  ;;  %p1808_p6 = scmp.lt.s32.totalorder %s33_s27, %s33_s27 }
  0x15   :  { %p1809_p7 = scmp.lt.s32.totalorder %s1807_s29, %s1803_s28 }
  0x17   :  { %p1810_p8 = por %p1809_p7, %p1808_p6 }
  0x19   :  { %p1811_p9 = pnand %p1810_p8, %p1804_p5 }
  0x1b   :  { %1814 = shalt.err (!%p1811_p9)
}
  0x1c   :  { %s1887_s30 = smov 128   ;;  %s1888_s6 = smov 8  }
  0x1d   :  { %38 = dma.hbm_to_vmem [thread:$0]  %s2104_s1, 256, %s33_s27, [#allocation6], %s1887_s30, %s1887_s30, %s1888_s6  }
  0x1e   :  { %s1889_s9 = smov [#allocation7]  }
  0x1f   :  { %s44_s0 = sshll.u32 %s1889_s9, 4  ;;  %s45_s0 = int_to_ptr.vmem [resolvable:$true] %s44_s0 }
  0x20   :  { %s1823_s10 = scalar_lea.vmem %s45_s0, 512  ;;  %p1828_p11 = scmp.lt.s32.totalorder %s45_s0, %s45_s0 }
  0x21   :  { %p1824_p10 = scmp.ne.s32.totalorder %s45_s0, %s1823_s10  ;;  %p1829_p12 = scmp.lt.s32.totalorder %s1823_s10, %s1823_s10 }
  0x23   :  { %p1830_p13 = por %p1829_p12, %p1828_p11 }
  0x25   :  { %p1831_p0 = pnand %p1830_p13, %p1824_p10 }
  0x27   :  { %1834 = shalt.err (!%p1831_p0)
}
  0x28   :  { %50 = dma.hbm_to_vmem [thread:$0]  %s2105_s2, 512, %s45_s0, [#allocation6], %s1887_s30, %s1887_s30, %s1888_s6  }
  0x29   :  { %1875 = dma.done.wait [#allocation3], 128  }
  0x2a   :  { %1876 = vsyncadd [#allocation3], 4294967168 }
  0x2b   :  { %1877 = dma.done.wait [#allocation6], 1536  }
  0x2c   :  { %1878 = vsyncadd [#allocation6], 4294965760  ;;  %v1890_v0 = vmov 0.0   ;;  %vm1891_vm0 = vmmov 0   ;;  %vm82_vm1 = vcmask 261120   ;;  %v74_v1 = vld [vmem:[#allocation7 + $0x18] sm:$0xff]  ;;  %v173_v10 = vlaneseq }
  0x2d   :  { %1640 = vmatprep.subr.mxu0 %v1890_v0  ;;  %1648 = vmatprep.mubr.msk.f32.mxu0 %vm1891_vm0, %v1890_v0  ;;  %v73_v2 = vld [vmem:[#allocation7 + $0x10] sm:$0xff]  ;;  %v72_v3 = vld [vmem:[#allocation7 + $0x8] sm:$0xff]  ;;  %v71_v4 = vld [vmem:[#allocation7] sm:$0xff]  ;;  %v1892_v8 = vmov 1966171168   ;;  %vm818_vm2 = vcmask 57344  }
  0x2e   :  { %1651 = vmatprep.subr.mxu1 %v1890_v0  ;;  %1653 = vmatprep.mubr.msk.f32.mxu1 %vm1891_vm0, %v1890_v0  ;;  %v70_v5 = vld [vmem:[#allocation2] sm:$0xff]  ;;  %v62_v6 = vld [vmem:[#allocation5] sm:$0xff]  ;;  %v171_v9 = vunpack.c.l.s4 %v1892_v8  ;;  %v174_v12 = vshrl.u32 %v173_v10, 7  ;;  %v63_v23 = vld [vmem:[#allocation5 + $0x8] sm:$0xff]  ;;  %vm907_vm3 = vcmask 64512   ;;  %vm1493_vm4 = vcmask 1041409  }
  0x2f   :  { %1641 = vmatpush3.xpose.msk.msra.mxu0 %vm82_vm1, %v74_v1  ;;  %1652 = vmatpush3.xpose.msk.msra.mxu1 %vm82_vm1, %v62_v6  ;;  %v1956_v7 = vld [vmem:[#allocation5 + $0x20] sm:$0xff]  ;;  %v1573_v13 = vld [vmem:[%s2106_s3] ss:$0 sm:$0xff]  ;;  %v1965_v25 = vld [vmem:[#allocation5 + $0x30] sm:$0xff]  ;;  %vm1496_vm5 = vcmask 1042434   ;;  %vm1499_vm6 = vcmask 1043459  }
  0x30   :  { %1642 = vmatprep.subr.mxu0 %v1890_v0  ;;  %1656 = vmatprep.subr.mxu1 %v1890_v0  ;;  %v172_v11 = vunpack.c.0.s8 %v171_v9  ;;  %v1972_v27 = vld [vmem:[#allocation5 + $0x10] sm:$0xff]  ;;  %v1986_v30 = vld [vmem:[#allocation5 + $0x18] sm:$0xff]  ;;  %v1997_v33 = vld [vmem:[#allocation5 + $0x28] sm:$0xff]  ;;  %vm1502_vm7 = vcmask 1044484   ;;  %vm1505_vm8 = vcmask 1045509   ;;  %vm1508_vm9 = vcmask 1046534  }
  0x31   :  { %v2005_v35 = vld [vmem:[#allocation5 + $0x38] sm:$0xff]  ;;  %vm1511_vm10 = vcmask 1047559  }
  0x32   :  { %v175_v14 = vsub.s32 %v172_v11, %v174_v12 }
  0x33   :  { %1643 = vmatpush3.xpose.msk.msra.mxu0 %vm82_vm1, %v73_v2 }
  0x34   :  { %1644 = vmatprep.subr.mxu0 %v1890_v0 }
  0x37   :  { %1645 = vmatpush3.xpose.msk.msra.mxu0 %vm82_vm1, %v72_v3 }
  0x38   :  { %1646 = vmatprep.subr.mxu0 %v1890_v0 }
  0x3b   :  { %1647 = vmatpush3.xpose.msk.msra.mxu0 %vm82_vm1, %v71_v4 }
  0x3c   :  { %1671 = vmatprep.subr.mxu0 %v1890_v0 }
  0x3e   :  { %1649 = vmatmul.mubr.msk.f32.vlgmr.msra.gmra.mxu0 %vm82_vm1, %v70_v5 }
  0x3f   :  { %1673 = vmatprep.mubr.msk.f32.mxu0 %vm1891_vm0, %v1890_v0  ;;  %1672 = vmatpush3.xpose.msk.msra.mxu0 %vm82_vm1, %v1956_v7 }
  0x40   :  { %1681 = vmatprep.subr.mxu0 %v1890_v0 }
  0xfe   :  { %v164_v15 = vpop.f32.mrf.mxu0 }
  0xff   :  { %v165_v16 = vadd.f32 %v1573_v13, %v164_v15 }
 0x100   :  { %v1650_v17 = vpop.f32.mrf.mxu0 }
 0x101   :  { %v169_v18 = vcombine.high %v165_v16, %v165_v16  ;;  %v176_v19 = vrot.slane %v165_v16, %v175_v14 }
 0x103   :  { %v183_v20 = vrot.slane %v169_v18, %v175_v14  ;;  %v184_v21 = vcombine.high %v176_v19, %v176_v19  ;;  %v192_v22 = vrot.slane %v176_v19, %v175_v14 }
 0x105   :  { %v199_v24 = vrot.slane %v183_v20, %v175_v14  ;;  %1654 = vmatmul.mubr.msk.f32.vlgmr.msra.gmra.mxu1 %vm82_vm1, %v192_v22  ;;  %v206_v26 = vrot.slane %v184_v21, %v175_v14  ;;  %v214_v29 = vcombine.high %v192_v22, %v192_v22  ;;  %v185_v31 = vcombine.high %v183_v20, %v183_v20 }
 0x106   :  { %1657 = vmatpush3.xpose.msk.msra.mxu1 %vm82_vm1, %v63_v23  ;;  %1658 = vmatprep.mubr.msk.f32.mxu1 %vm1891_vm0, %v1890_v0 }
 0x107   :  { %1674 = vmatmul.mubr.msk.f32.vlgmr.msra.gmra.mxu0 %vm82_vm1, %v199_v24  ;;  %1661 = vmatprep.subr.mxu1 %v1890_v0  ;;  %v215_v28 = vcombine.high %v199_v24, %v199_v24  ;;  %v216_v32 = vcombine.high %v206_v26, %v206_v26  ;;  %v213_v34 = vrot.slane %v185_v31, %v175_v14 }
 0x108   :  { %1682 = vmatpush3.xpose.msk.msra.mxu0 %vm82_vm1, %v1965_v25  ;;  %1683 = vmatprep.mubr.msk.f32.mxu0 %vm1891_vm0, %v1890_v0 }
 0x109   :  { %1659 = vmatmul.mubr.msk.f32.vlgmr.msra.gmra.mxu1 %vm82_vm1, %v206_v26  ;;  %1691 = vmatprep.subr.mxu0 %v1890_v0  ;;  %v217_v36 = vcombine.high %v213_v34, %v213_v34 }
 0x10a   :  { %1662 = vmatpush3.xpose.msk.msra.mxu1 %vm82_vm1, %v1972_v27  ;;  %1663 = vmatprep.mubr.msk.f32.mxu1 %vm1891_vm0, %v1890_v0 }
 0x10b   :  { %1684 = vmatmul.mubr.msk.f32.vlgmr.msra.gmra.mxu0 %vm82_vm1, %v215_v28  ;;  %1666 = vmatprep.subr.mxu1 %v1890_v0 }
 0x10c   :  { %1692 = vmatpush3.msra.mxu0 %v62_v6  ;;  %1693 = vmatprep.mubr.msk.f32.mxu0 %vm1891_vm0, %v1890_v0 }
 0x10d   :  { %1664 = vmatmul.mubr.msk.f32.vlgmr.msra.gmra.mxu1 %vm82_vm1, %v214_v29  ;;  %1701 = vmatprep.subr.mxu0 %v1890_v0 }
 0x10e   :  { %1667 = vmatpush3.xpose.msk.msra.mxu1 %vm82_vm1, %v1986_v30  ;;  %1668 = vmatprep.mubr.msk.f32.mxu1 %vm1891_vm0, %v1890_v0 }
 0x10f   :  { %1676 = vmatprep.subr.mxu1 %v1890_v0 }
 0x111   :  { %1669 = vmatmul.mubr.msk.f32.vlgmr.msra.gmra.mxu1 %vm82_vm1, %v216_v32 }
 0x112   :  { %1677 = vmatpush3.xpose.msk.msra.mxu1 %vm82_vm1, %v1997_v33  ;;  %1678 = vmatprep.mubr.msk.f32.mxu1 %vm1891_vm0, %v1890_v0 }
 0x113   :  { %1686 = vmatprep.subr.mxu1 %v1890_v0 }
 0x115   :  { %1679 = vmatmul.mubr.msk.f32.vlgmr.msra.gmra.mxu1 %vm82_vm1, %v213_v34 }
 0x116   :  { %1687 = vmatpush3.xpose.msk.msra.mxu1 %vm82_vm1, %v2005_v35  ;;  %1688 = vmatprep.mubr.msk.f32.mxu1 %vm1891_vm0, %v1890_v0 }
 0x117   :  { %1696 = vmatprep.subr.mxu1 %v1890_v0 }
 0x119   :  { %1689 = vmatmul.mubr.msk.f32.vlgmr.msra.gmra.mxu1 %vm82_vm1, %v217_v36 }
 0x11a   :  { %1697 = vmatpush3.msra.mxu1 %v63_v23  ;;  %1698 = vmatprep.mubr.msk.f32.mxu1 %vm1891_vm0, %v1890_v0 }
 0x11b   :  { %1706 = vmatprep.subr.mxu1 %v1890_v0 }
 0x1c5   :  { %v289_v37 = vpop.f32.mrf.mxu1 }
 0x1c6   :  { %v819_v38 = vsel %vm818_vm2, %v289_v37, -inf }
 0x1c7   :  { %v589_v39 = vpop.f32.mrf.mxu0  ;;  %820 = vmax.xlane.f32.xlu0 %v819_v38  ;;  %v1655_v40 = vpop.f32.mrf.mxu1 }
 0x1c8   :  { %v831_v48 = vsel %vm818_vm2, %v589_v39, -inf }
 0x1c9   :  { %v364_v41 = vpop.f32.mrf.mxu1  ;;  %v1675_v42 = vpop.f32.mrf.mxu0 }
 0x1ca   :  { %v822_v43 = vsel %vm818_vm2, %v364_v41, -inf }
 0x1cb   :  { %v739_v44 = vpop.f32.mrf.mxu0  ;;  %823 = vmax.xlane.f32.xlu0 %v822_v43  ;;  %v1660_v45 = vpop.f32.mrf.mxu1 }
 0x1cc   :  { %v837_v52 = vsel %vm818_vm2, %v739_v44, -inf }
 0x1cd   :  { %v439_v46 = vpop.f32.mrf.mxu1  ;;  %v1685_v47 = vpop.f32.mrf.mxu0 }
 0x1ce   :  { %v825_v49 = vsel %vm818_vm2, %v439_v46, -inf }
 0x1cf   :  { %832 = vmax.xlane.f32.xlu0 %v831_v48  ;;  %826 = vmax.xlane.f32.xlu1 %v825_v49  ;;  %v1665_v50 = vpop.f32.mrf.mxu1 }
 0x1d1   :  { %v514_v51 = vpop.f32.mrf.mxu1 }
 0x1d2   :  { %v828_v53 = vsel %vm818_vm2, %v514_v51, -inf }
 0x1d3   :  { %838 = vmax.xlane.f32.xlu0 %v837_v52  ;;  %829 = vmax.xlane.f32.xlu1 %v828_v53  ;;  %v1670_v54 = vpop.f32.mrf.mxu1 }
 0x1d5   :  { %v664_v55 = vpop.f32.mrf.mxu1 }
 0x1d6   :  { %v834_v56 = vsel %vm818_vm2, %v664_v55, -inf }
 0x1d7   :  { %835 = vmax.xlane.f32.xlu1 %v834_v56  ;;  %v1680_v57 = vpop.f32.mrf.mxu1 }
 0x1d9   :  { %v814_v58 = vpop.f32.mrf.mxu1 }
 0x1da   :  { %v840_v59 = vsel %vm818_vm2, %v814_v58, -inf }
 0x1db   :  { %841 = vmax.xlane.f32.xlu1 %v840_v59  ;;  %v1690_v60 = vpop.f32.mrf.mxu1 }
 0x250   :  { %v821_v61 = vpop.xlane.xlu0 %820 }
 0x251   :  { %v843_v62 = vsub.f32 %v289_v37, %v821_v61 }
 0x253   :  { %v851_v63 = vmul.f32 1.442695, %v843_v62 }
 0x254   :  { %v824_v1 = vpop.xlane.xlu0 %823 }
 0x255   :  { %1743 = vpow2.f32 %v851_v63  ;;  %v844_v2 = vsub.f32 %v364_v41, %v824_v1 }
 0x257   :  { %v853_v3 = vmul.f32 1.442695, %v844_v2 }
 0x258   :  { %v833_v4 = vpop.xlane.xlu0 %832  ;;  %v827_v5 = vpop.xlane.xlu1 %826 }
 0x259   :  { %1745 = vpow2.f32 %v853_v3  ;;  %v847_v6 = vsub.f32 %v589_v39, %v833_v4  ;;  %v845_v8 = vsub.f32 %v439_v46, %v827_v5 }
 0x25b   :  { %v855_v9 = vmul.f32 1.442695, %v845_v8  ;;  %v859_v10 = vmul.f32 1.442695, %v847_v6 }
 0x25c   :  { %v839_v11 = vpop.xlane.xlu0 %838  ;;  %v830_v12 = vpop.xlane.xlu1 %829 }
 0x25d   :  { %v849_v13 = vsub.f32 %v739_v44, %v839_v11  ;;  %v846_v14 = vsub.f32 %v514_v51, %v830_v12  ;;  %1747 = vpow2.f32 %v855_v9 }
 0x25e   :  { %1749 = vpow2.f32 %v859_v10 }
 0x25f   :  { %v857_v15 = vmul.f32 1.442695, %v846_v14  ;;  %v863_v16 = vmul.f32 1.442695, %v849_v13 }
 0x260   :  { %v836_v17 = vpop.xlane.xlu1 %835 }
 0x261   :  { %v848_v18 = vsub.f32 %v664_v55, %v836_v17  ;;  %1751 = vpow2.f32 %v857_v15 }
 0x262   :  { %v1744_v19 = vpop.eup %1743  ;;  %1753 = vpow2.f32 %v863_v16 }
 0x263   :  { %v861_v20 = vmul.f32 1.442695, %v848_v18  ;;  %v867_v21 = vsel %vm818_vm2, %v1744_v19, 0.0 }
 0x264   :  { %868 = vadd.xlane.f32.xlu0 %v867_v21  ;;  %v842_v22 = vpop.xlane.xlu1 %841 }
 0x265   :  { %1755 = vpow2.f32 %v861_v20  ;;  %v850_v23 = vsub.f32 %v814_v58, %v842_v22 }
 0x266   :  { %v1746_v24 = vpop.eup %1745 }
 0x267   :  { %v865_v26 = vmul.f32 1.442695, %v850_v23  ;;  %v870_v28 = vsel %vm818_vm2, %v1746_v24, 0.0 }
 0x268   :  { %871 = vadd.xlane.f32.xlu1 %v870_v28 }
 0x269   :  { %1757 = vpow2.f32 %v865_v26 }
 0x26a   :  { %v1748_v29 = vpop.eup %1747 }
 0x26b   :  { %v873_v31 = vsel %vm818_vm2, %v1748_v29, 0.0  ;;  %v1750_v32 = vpop.eup %1749 }
 0x26c   :  { %874 = vadd.xlane.f32.xlu0 %v873_v31  ;;  %v879_v36 = vsel %vm818_vm2, %v1750_v32, 0.0 }
 0x26e   :  { %v1752_v34 = vpop.eup %1751 }
 0x26f   :  { %v876_v37 = vsel %vm818_vm2, %v1752_v34, 0.0  ;;  %v2030_v38 = vpop.eup %1753 }
 0x270   :  { %880 = vadd.xlane.f32.xlu0 %v879_v36  ;;  %877 = vadd.xlane.f32.xlu1 %v876_v37  ;;  %v885_v41 = vsel %vm818_vm2, %v2030_v38, 0.0 }
 0x272   :  { %v2032_v39 = vpop.eup %1755 }
 0x273   :  { %v882_v40 = vsel %vm818_vm2, %v2032_v39, 0.0 }
 0x274   :  { %886 = vadd.xlane.f32.xlu0 %v885_v41  ;;  %883 = vadd.xlane.f32.xlu1 %v882_v40 }
 0x276   :  { %v2038_v42 = vpop.eup %1757 }
 0x277   :  { %v888_v43 = vsel %vm818_vm2, %v2038_v42, 0.0 }
 0x278   :  { %889 = vadd.xlane.f32.xlu1 %v888_v43 }
 0x2ed   :  { %v869_v44 = vpop.xlane.xlu0 %868 }
 0x2ee   :  { %1759 = vrcp.f32 %v869_v44 }
 0x2f1   :  { %v872_v45 = vpop.xlane.xlu1 %871 }
 0x2f2   :  { %1761 = vrcp.f32 %v872_v45 }
 0x2f5   :  { %v875_v46 = vpop.xlane.xlu0 %874 }
 0x2f6   :  { %1763 = vrcp.f32 %v875_v46 }
 0x2f9   :  { %v881_v47 = vpop.xlane.xlu0 %880  ;;  %v878_v48 = vpop.xlane.xlu1 %877 }
 0x2fa   :  { %1765 = vrcp.f32 %v881_v47 }
 0x2fb   :  { %v1760_v49 = vpop.eup %1759  ;;  %1767 = vrcp.f32 %v878_v48 }
 0x2fc   :  { %v892_v50 = vmul.f32 %v1760_v49, %v1744_v19 }
 0x2fd   :  { %v887_v51 = vpop.xlane.xlu0 %886  ;;  %v884_v52 = vpop.xlane.xlu1 %883 }
 0x2fe   :  { %1694 = vmatmul.mubr.msk.f32.vlgmr.msra.gmra.mxu0 %vm907_vm3, %v892_v50  ;;  %1769 = vrcp.f32 %v887_v51 }
 0x2ff   :  { %v1762_v53 = vpop.eup %1761  ;;  %1702 = vmatpush3.msra.mxu0 %v1972_v27  ;;  %1703 = vmatprep.mubr.msk.f32.mxu0 %vm1891_vm0, %v1890_v0  ;;  %1771 = vrcp.f32 %v884_v52 }
 0x300   :  { %v894_v54 = vmul.f32 %v1762_v53, %v1746_v24  ;;  %1711 = vmatprep.subr.mxu0 %v1890_v0 }
 0x301   :  { %v890_v55 = vpop.xlane.xlu1 %889 }
 0x302   :  { %1699 = vmatmul.mubr.msk.f32.vlgmr.msra.gmra.mxu1 %vm907_vm3, %v894_v54  ;;  %1773 = vrcp.f32 %v890_v55  ;;  %v1492_v58 = vrot.slane %v894_v54, 7 }
 0x303   :  { %1707 = vmatpush3.msra.mxu1 %v1986_v30  ;;  %1708 = vmatprep.mubr.msk.f32.mxu1 %vm1891_vm0, %v1890_v0  ;;  %v1764_v56 = vpop.eup %1763 }
 0x304   :  { %1716 = vmatprep.subr.mxu1 %v1890_v0  ;;  %v896_v27 = vmul.f32 %v1764_v56, %v1748_v29 }
 0x306   :  { %1704 = vmatmul.mubr.msk.f32.vlgmr.msra.gmra.mxu0 %vm907_vm3, %v896_v27  ;;  %v1495_v30 = vrot.slane %v896_v27, 6 }
 0x307   :  { %v1766_v57 = vpop.eup %1765  ;;  %1712 = vmatpush3.msra.mxu0 %v1956_v7  ;;  %1713 = vmatprep.mubr.msk.f32.mxu0 %vm1891_vm0, %v1890_v0  ;;  %v1494_v7 = vsel %vm1493_vm4, %v1492_v58, %v892_v50 }
 0x308   :  { %v1768_v59 = vpop.eup %1767  ;;  %v900_v60 = vmul.f32 %v1766_v57, %v1750_v32  ;;  %1721 = vmatprep.subr.mxu0 %v1890_v0  ;;  %v1497_v3 = vsel %vm1496_vm5, %v1495_v30, %v1494_v7 }
 0x309   :  { %v898_v61 = vmul.f32 %v1768_v59, %v1752_v34 }
 0x30a   :  { %1714 = vmatmul.mubr.msk.f32.vlgmr.msra.gmra.mxu0 %vm907_vm3, %v900_v60  ;;  %v1501_v4 = vrot.slane %v900_v60, 4 }
 0x30b   :  { %v1770_v62 = vpop.eup %1769  ;;  %1709 = vmatmul.mubr.msk.f32.vlgmr.msra.gmra.mxu1 %vm907_vm3, %v898_v61  ;;  %1722 = vmatpush3.msra.mxu0 %v1965_v25  ;;  %v1498_v63 = vrot.slane %v898_v61, 5 }
 0x30c   :  { %v1772_v1 = vpop.eup %1771  ;;  %1717 = vmatpush3.msra.mxu1 %v1997_v33  ;;  %1718 = vmatprep.mubr.msk.f32.mxu1 %vm1891_vm0, %v1890_v0  ;;  %v904_v2 = vmul.f32 %v1770_v62, %v2030_v38 }
 0x30d   :  { %1723 = vmatprep.mubr.msk.f32.mxu0 %vm1891_vm0, %v1890_v0  ;;  %1726 = vmatprep.subr.mxu1 %v1890_v0  ;;  %v902_v25 = vmul.f32 %v1772_v1, %v2032_v39  ;;  %v1500_v5 = vsel %vm1499_vm6, %v1498_v63, %v1497_v3 }
 0x30e   :  { %1724 = vmatmul.mubr.msk.f32.vlgmr.msra.gmra.mxu0 %vm907_vm3, %v904_v2  ;;  %v1507_v8 = vrot.slane %v904_v2, 2  ;;  %v1503_v10 = vsel %vm1502_vm7, %v1501_v4, %v1500_v5 }
 0x30f   :  { %v1774_v33 = vpop.eup %1773  ;;  %1719 = vmatmul.mubr.msk.f32.vlgmr.msra.gmra.mxu1 %vm907_vm3, %v902_v25  ;;  %v1504_v6 = vrot.slane %v902_v25, 3 }
 0x310   :  { %1727 = vmatpush3.msra.mxu1 %v2005_v35  ;;  %1728 = vmatprep.mubr.msk.f32.mxu1 %vm1891_vm0, %v1890_v0  ;;  %v906_v9 = vmul.f32 %v1774_v33, %v2038_v42 }
 0x311   :  { %v1506_v11 = vsel %vm1505_vm8, %v1504_v6, %v1503_v10 }
 0x312   :  { %v1510_v12 = vrot.slane %v906_v9, 1  ;;  %v1509_v13 = vsel %vm1508_vm9, %v1507_v8, %v1506_v11 }
 0x313   :  { %1729 = vmatmul.mubr.msk.f32.vlgmr.msra.gmra.mxu1 %vm907_vm3, %v906_v9 }
 0x314   :  { %v1512_v14 = vsel %vm1511_vm10, %v1510_v12, %v1509_v13 }
 0x315   :  { %1514 = vst.msk [vmem:[#allocation8] sm:$0xff] %vm907_vm3, %v1512_v14 }
 0x3be   :  { %v977_v35 = vpop.f32.mrf.mxu0 }
 0x3c0   :  { %v1695_v15 = vpop.f32.mrf.mxu0 }
 0x3c2   :  { %v1050_v0 = vpop.f32.mrf.mxu1 }
 0x3c3   :  { %v1523_v18 = vrot.slane %v1050_v0, 7 }
 0x3c4   :  { %v1700_v16 = vpop.f32.mrf.mxu1 }
 0x3c5   :  { %v1524_v23 = vsel %vm1493_vm4, %v1523_v18, %v977_v35 }
 0x3c6   :  { %v1123_v17 = vpop.f32.mrf.mxu0 }
 0x3c7   :  { %v1525_v20 = vrot.slane %v1123_v17, 6 }
 0x3c8   :  { %v1705_v19 = vpop.f32.mrf.mxu0 }
 0x3c9   :  { %v1526_v28 = vsel %vm1496_vm5, %v1525_v20, %v1524_v23 }
 0x3ca   :  { %v1269_v21 = vpop.f32.mrf.mxu0 }
 0x3cb   :  { %v1196_v22 = vpop.f32.mrf.mxu1  ;;  %v1529_v29 = vrot.slane %v1269_v21, 4 }
 0x3cc   :  { %v1527_v24 = vrot.slane %v1196_v22, 5  ;;  %v1715_v26 = vpop.f32.mrf.mxu0 }
 0x3cd   :  { %v1710_v31 = vpop.f32.mrf.mxu1 }
 0x3ce   :  { %v1528_v32 = vsel %vm1499_vm6, %v1527_v24, %v1526_v28  ;;  %v1415_v34 = vpop.f32.mrf.mxu0 }
 0x3cf   :  { %v1342_v36 = vpop.f32.mrf.mxu1  ;;  %v1530_v39 = vsel %vm1502_vm7, %v1529_v29, %v1528_v32  ;;  %v1533_v40 = vrot.slane %v1415_v34, 2 }
 0x3d0   :  { %v1531_v37 = vrot.slane %v1342_v36, 3  ;;  %v1725_v38 = vpop.f32.mrf.mxu0 }
 0x3d1   :  { %v1720_v41 = vpop.f32.mrf.mxu1 }
 0x3d2   :  { %v1532_v42 = vsel %vm1505_vm8, %v1531_v37, %v1530_v39 }
 0x3d3   :  { %v1488_v43 = vpop.f32.mrf.mxu1  ;;  %v1534_v45 = vsel %vm1508_vm9, %v1533_v40, %v1532_v42 }
 0x3d4   :  { %v1535_v44 = vrot.slane %v1488_v43, 1 }
 0x3d5   :  { %v1730_v46 = vpop.f32.mrf.mxu1 }
 0x3d6   :  { %v1536_v47 = vsel %vm1511_vm10, %v1535_v44, %v1534_v45 }
 0x3d7   :  { %1538 = vst.msk [vmem:[#allocation9] sm:$0xff] %vm82_vm1, %v1536_v47 }
 0x3d8   :  { %1543 = vsyncadd [#allocation4], 96  ;;  %s1893_s3 = smov [#allocation8]  }
 0x3d9   :  { %s1544_s13 = sshll.u32 %s1893_s3, 4  ;;  %s1545_s13 = int_to_ptr.vmem [resolvable:$true] %s1544_s13 }
 0x3da   :  { %s1835_s14 = scalar_lea.vmem %s1545_s13, 32  ;;  %s1839_s15 = scalar_lea.vmem %s1545_s13, 128 }
 0x3db   :  { %p1836_p1 = scmp.ne.s32.totalorder %s1545_s13, %s1835_s14  ;;  %p1840_p2 = scmp.lt.s32.totalorder %s1545_s13, %s1545_s13 }
 0x3dc   :  { %p1841_p3 = scmp.lt.s32.totalorder %s1839_s15, %s1835_s14 }
 0x3de   :  { %p1842_p4 = por %p1841_p3, %p1840_p2 }
 0x3e0   :  { %p1843_p5 = pnand %p1842_p4, %p1836_p1 }
 0x3e2   :  { %1846 = shalt.err (!%p1843_p5)
}
 0x3e3   :  { %1550 = dma.vmem_to_hbm [thread:$0]  %s1545_s13, 32, %s2107_s4, [#allocation4], %s1884_s22, %s1884_s22, %s1885_s23  }
 0x3e4   :  { %1555 = vsyncadd [#allocation10], 96  ;;  %s1894_s18 = smov [#allocation9]  }
 0x3e5   :  { %s1556_s19 = sshll.u32 %s1894_s18, 4  ;;  %s1557_s19 = int_to_ptr.vmem [resolvable:$true] %s1556_s19 }
 0x3e6   :  { %s1855_s20 = scalar_lea.vmem %s1557_s19, 32  ;;  %s1859_s21 = scalar_lea.vmem %s1557_s19, 128 }
 0x3e7   :  { %p1856_p6 = scmp.ne.s32.totalorder %s1557_s19, %s1855_s20  ;;  %p1860_p7 = scmp.lt.s32.totalorder %s1557_s19, %s1557_s19 }
 0x3e8   :  { %p1861_p8 = scmp.lt.s32.totalorder %s1859_s21, %s1855_s20 }
 0x3ea   :  { %p1862_p9 = por %p1861_p8, %p1860_p7 }
 0x3ec   :  { %p1863_p10 = pnand %p1862_p9, %p1856_p6 }
 0x3ee   :  { %1866 = shalt.err (!%p1863_p10)
}
 0x3ef   :  { %1562 = dma.vmem_to_hbm [thread:$0]  %s1557_s19, 32, %s2108_s5, [#allocation10], %s1884_s22, %s1884_s22, %s1885_s23  }
 0x3f0   :  { %1879 = dma.done.wait [#allocation4], 128  }
 0x3f1   :  { %1880 = vsyncadd [#allocation4], 4294967168 }
 0x3f2   :  { %1881 = dma.done.wait [#allocation10], 128  }
 0x3f3   :  { %1882 = vsyncadd [#allocation10], 4294967168 }
 0x3f4   :  { %1569 = vsyncpa [#allocation3], 1 }
 0x3f5   :  { %1570 = vsyncpa [#allocation6], 1 }
 0x3f6   :  { %1571 = vsyncpa [#allocation4], 1 }
 0x3f7   :  { %1572 = vsyncpa [#allocation10], 1 }

</bundles_post_ra>
